<compile_context>
chip_gen: v6e
topology: v6e:2x2x1
jax: 0.10.0
libtpu: 0.0.40
codegen_flags: <defaults>
</compile_context>

<pallas_src>
import functools

import jax
import jax.numpy as jnp
from jax import lax
from jax.experimental import pallas as pl
from jax.experimental.pallas import tpu as pltpu

EPS = 1e-5  # nn.BatchNorm2d default eps


def _resblock_kernel(x_ref, row_ref, col_ref, w3_ref, b3_ref, w1_ref, b1_ref,
                     out_ref, *, h, w, p_real, conv_dtype):
    # x_ref / out_ref : (C, P_pad)  channels-major, pixels on lanes
    # row_ref/col_ref : (1, P_pad)  int32 spatial coordinates per pixel column
    # w3_ref          : (C, 9*C)    packed 3x3 taps, col = ((dh+1)*3+(dw+1))*C + ci
    # w1_ref          : (C, C)      1x1 conv as a channel matmul
    # b3_ref / b1_ref : (C, 1)
    c, p = x_ref.shape
    padded = p_real != p
    inv_p = 1.0 / float(p_real)

    x = x_ref[...]                                    # fp32
    relu_x = jnp.maximum(x, 0.0)

    # Cast the roll source to the MXU operand dtype early only when C stays
    # aligned to the packed sublane tile (avoids misaligned packed concats).
    pack = 4 // jnp.dtype(conv_dtype).itemsize        # rows per 32-bit sublane
    early_cast = (pack > 1) and (c % (8 * pack) == 0)
    tap_src = relu_x.astype(conv_dtype) if early_cast else relu_x

    # Border masks for the 8 non-center taps (comparisons only, no div/mod).
    row = row_ref[...]
    col = col_ref[...]
    row_ok = {-1: row >= 1, 1: row < h - 1}
    col_ok = {-1: col >= 1, 1: col < w - 1}

    # im2col: 9 shifted+masked copies stacked on the sublane axis -> (9C, P).
    # A spatial shift (dh, dw) is a lane roll by -(dh*w + dw); rolls run on the
    # otherwise-idle XLU.  Valid taps never cross an image boundary, so the
    # wrap-around of the roll only touches masked (or padded) columns.
    taps = []
    for dh in (-1, 0, 1):
        for dw in (-1, 0, 1):
            s = dh * w + dw
            shifted = pltpu.roll(tap_src, shift=(-s) % p, axis=1) if s else tap_src
            masks = []
            if dh != 0:
                masks.append(row_ok[dh])
            if dw != 0:
                masks.append(col_ok[dw])
            if masks:
                valid = masks[0] if len(masks) == 1 else masks[0] & masks[1]
                shifted = jnp.where(valid, shifted, 0.0)
            taps.append(shifted)
    cat = jnp.concatenate(taps, axis=0)               # (9C, P)
    im2col = cat if early_cast else cat.astype(conv_dtype)

    if padded:
        lane_ok = lax.broadcasted_iota(jnp.int32, (1, p), 1) < p_real

    def batch_stats(t):
        # One-pass biased batch statistics (training-mode BN, gamma=1, beta=0),
        # excluding the zero-padded lane columns.
        tv = jnp.where(lane_ok, t, 0.0) if padded else t
        m = jnp.sum(tv, axis=1, keepdims=True) * inv_p
        q = jnp.sum(tv * tv, axis=1, keepdims=True) * inv_p
        return m, lax.rsqrt(q - m * m + EPS)

    # 3x3 conv: one fused MXU matmul, K = 9*C, lanes = P (dense), fp32 acc.
    acc = jnp.dot(w3_ref[...], im2col,
                  preferred_element_type=jnp.float32) + b3_ref[...]

    # BatchNorm #1 + ReLU.
    m1, rs1 = batch_stats(acc)
    hid = jnp.maximum((acc - m1) * rs1, 0.0)

    # 1x1 conv: (C, C) x (C, P) MXU matmul, fp32 acc.
    z = jnp.dot(w1_ref[...], hid.astype(conv_dtype),
                preferred_element_type=jnp.float32) + b1_ref[...]

    # BatchNorm #2 + residual add; lane-dense unmasked store.
    m2, rs2 = batch_stats(z)
    out_ref[...] = x + (z - m2) * rs2


def resblock_pallas(x_nchw, w3_oihw, b3, w1_oihw, b1, *, conv_dtype=jnp.bfloat16):
    """detectron2 ResBlock forward. x_nchw: (N,C,H,W); weights in PyTorch OIHW."""
    n, c, h, w = x_nchw.shape
    p = n * h * w
    p_pad = -(-p // 128) * 128                      # lane-dense pixel axis

    # channels-major (C, N*H*W): only an N<->C swap, spatial stays contiguous.
    x_cm = jnp.transpose(x_nchw, (1, 0, 2, 3)).reshape(c, p).astype(jnp.float32)
    if p_pad != p:
        x_cm = jnp.pad(x_cm, ((0, 0), (0, p_pad - p)))

    # spatial coordinates per pixel column (precomputed: no in-kernel div/mod)
    pix = jnp.arange(p_pad, dtype=jnp.int32)
    row_idx = ((pix // w) % h).reshape(1, p_pad)
    col_idx = (pix % w).reshape(1, p_pad)

    # (Cout, Cin, 3, 3) -> (Cout, 9*Cin), column = (kh*3 + kw)*Cin + ci
    w3_packed = jnp.transpose(w3_oihw, (0, 2, 3, 1)).reshape(c, 9 * c).astype(conv_dtype)
    # (Cout, Cin, 1, 1) -> (Cout, Cin)
    w1_mat = w1_oihw[:, :, 0, 0].astype(conv_dtype)

    kernel = functools.partial(_resblock_kernel, h=h, w=w, p_real=p,
                               conv_dtype=conv_dtype)

    out_cm = pl.pallas_call(
        kernel,
        out_shape=jax.ShapeDtypeStruct((c, p_pad), jnp.float32),
        in_specs=[pl.BlockSpec(memory_space=pltpu.MemorySpace.VMEM)] * 7,
        out_specs=pl.BlockSpec(memory_space=pltpu.MemorySpace.VMEM),
    )(x_cm, row_idx, col_idx, w3_packed,
      b3.reshape(c, 1).astype(jnp.float32),
      w1_mat,
      b1.reshape(c, 1).astype(jnp.float32))

    out_cm = out_cm[:, :p]
    return jnp.transpose(out_cm.reshape(c, n, h, w), (1, 0, 2, 3))


def ref_forward(x, w3, b3, w1, b1):
    """Pure-JAX NCHW reference of the PyTorch ResBlock forward (training-mode BN)."""
    def bn(t):
        mean = jnp.mean(t, axis=(0, 2, 3), keepdims=True)
        var = jnp.mean((t - mean) ** 2, axis=(0, 2, 3), keepdims=True)
        return (t - mean) / jnp.sqrt(var + EPS)

    t = jnp.maximum(x, 0.0)
    t = lax.conv_general_dilated(t, w3, (1, 1), ((1, 1), (1, 1)),
                                 dimension_numbers=("NCHW", "OIHW", "NCHW"))
    t = t + b3[None, :, None, None]
    t = bn(t)
    t = jnp.maximum(t, 0.0)
    t = lax.conv_general_dilated(t, w1, (1, 1), ((0, 0), (0, 0)),
                                 dimension_numbers=("NCHW", "OIHW", "NCHW"))
    t = t + b1[None, :, None, None]
    t = bn(t)
    return x + t


def _make_inputs(key, n, c, h, w):
    k_x, k_w3, k_b3, k_w1, k_b1 = jax.random.split(key, 5)
    x = jax.random.normal(k_x, (n, c, h, w), jnp.float32)
    # kaiming_normal_(mode='fan_out', nonlinearity='relu'): std = sqrt(2/(Cout*kh*kw))
    w3 = ((2.0 / (c * 9)) ** 0.5) * jax.random.normal(k_w3, (c, c, 3, 3), jnp.float32)
    b3 = 0.1 * jax.random.normal(k_b3, (c,), jnp.float32)
    w1 = ((2.0 / c) ** 0.5) * jax.random.normal(k_w1, (c, c, 1, 1), jnp.float32)
    b1 = 0.1 * jax.random.normal(k_b1, (c,), jnp.float32)
    return x, w3, b3, w1, b1


if __name__ == "__main__":
    k1, k2, k3 = jax.random.split(jax.random.PRNGKey(0), 3)

    # Case 1: dim=8, lane-dense pixel axis (P = 2*16*16 = 512).
    x, w3, b3, w1, b1 = _make_inputs(k1, 2, 8, 16, 16)
    ref = ref_forward(x, w3, b3, w1, b1)

    out_f32 = resblock_pallas(x, w3, b3, w1, b1, conv_dtype=jnp.float32)
    jax.block_until_ready(out_f32)
    err = float(jnp.max(jnp.abs(out_f32 - ref)))
    assert jnp.allclose(out_f32, ref, rtol=1e-4, atol=1e-4), f"f32 max_err={err}"

    out_bf16 = resblock_pallas(x, w3, b3, w1, b1, conv_dtype=jnp.bfloat16)
    jax.block_until_ready(out_bf16)
    err = float(jnp.max(jnp.abs(out_bf16 - ref)))
    assert err < 5e-2, f"bf16 max_err={err}"

    # Case 2: P = 1*12*12 = 144 (not a multiple of 128) -> exercises the
    # lane-padding + masked-statistics path.
    x, w3, b3, w1, b1 = _make_inputs(k2, 1, 8, 12, 12)
    ref = ref_forward(x, w3, b3, w1, b1)
    out = resblock_pallas(x, w3, b3, w1, b1, conv_dtype=jnp.float32)
    jax.block_until_ready(out)
    err = float(jnp.max(jnp.abs(out - ref)))
    assert jnp.allclose(out, ref, rtol=1e-4, atol=1e-4), f"padded f32 max_err={err}"

    # Case 3: dim=16 with bf16 MXU operands -> exercises the packed
    # cast-before-roll im2col path (C aligned to the bf16 sublane tile).
    x, w3, b3, w1, b1 = _make_inputs(k3, 2, 16, 16, 16)
    ref = ref_forward(x, w3, b3, w1, b1)
    out = resblock_pallas(x, w3, b3, w1, b1, conv_dtype=jnp.bfloat16)
    jax.block_until_ready(out)
    err = float(jnp.max(jnp.abs(out - ref)))
    assert err < 1e-1, f"packed bf16 max_err={err}"

    print("KERNEL_OK")
</pallas_src>

<mosaic_0001>
module attributes {stable_mosaic.version = 11 : i64} {
  func.func @_resblock_kernel(%arg0: memref<8x512xf32, #tpu.memory_space<vmem>>, %arg1: memref<1x512xi32, #tpu.memory_space<vmem>>, %arg2: memref<1x512xi32, #tpu.memory_space<vmem>>, %arg3: memref<8x72xf32, #tpu.memory_space<vmem>>, %arg4: memref<8x1xf32, #tpu.memory_space<vmem>>, %arg5: memref<8x8xf32, #tpu.memory_space<vmem>>, %arg6: memref<8x1xf32, #tpu.memory_space<vmem>>, %arg7: memref<8x512xf32, #tpu.memory_space<vmem>>) attributes {dimension_semantics = [], scalar_prefetch = 0 : i64, scratch_operands = 0 : i64, tpu.core_type = #tpu.core_type<tc>} {
    %c0 = arith.constant 0 : index
    %c0_0 = arith.constant 0 : index
    %0 = vector.load %arg0[%c0, %c0_0] : memref<8x512xf32, #tpu.memory_space<vmem>>, vector<8x512xf32>
    %cst = arith.constant 0.000000e+00 : f32
    %1 = vector.broadcast %cst : f32 to vector<8x512xf32>
    %2 = arith.maximumf %0, %1 : vector<8x512xf32>
    %c0_1 = arith.constant 0 : index
    %c0_2 = arith.constant 0 : index
    %3 = vector.load %arg1[%c0_1, %c0_2] : memref<1x512xi32, #tpu.memory_space<vmem>>, vector<1x512xi32>
    %c0_3 = arith.constant 0 : index
    %c0_4 = arith.constant 0 : index
    %4 = vector.load %arg2[%c0_3, %c0_4] : memref<1x512xi32, #tpu.memory_space<vmem>>, vector<1x512xi32>
    %c1_i32 = arith.constant 1 : i32
    %5 = vector.broadcast %c1_i32 : i32 to vector<1x512xi32>
    %6 = arith.cmpi sge, %3, %5 : vector<1x512xi32>
    %c15_i32 = arith.constant 15 : i32
    %7 = vector.broadcast %c15_i32 : i32 to vector<1x512xi32>
    %8 = arith.cmpi slt, %3, %7 : vector<1x512xi32>
    %c1_i32_5 = arith.constant 1 : i32
    %9 = vector.broadcast %c1_i32_5 : i32 to vector<1x512xi32>
    %10 = arith.cmpi sge, %4, %9 : vector<1x512xi32>
    %c15_i32_6 = arith.constant 15 : i32
    %11 = vector.broadcast %c15_i32_6 : i32 to vector<1x512xi32>
    %12 = arith.cmpi slt, %4, %11 : vector<1x512xi32>
    %c17_i32 = arith.constant 17 : i32
    %13 = tpu.dynamic_rotate %2 by %c17_i32 dim 1 : vector<8x512xf32>, i32 -> vector<8x512xf32>
    %14 = arith.andi %6, %10 : vector<1x512xi1>
    %cst_7 = arith.constant 0.000000e+00 : f32
    %15 = vector.shape_cast %14 : vector<1x512xi1> to vector<1x512xi1>
    %16 = vector.broadcast %15 : vector<1x512xi1> to vector<8x512xi1>
    %17 = vector.broadcast %cst_7 : f32 to vector<8x512xf32>
    %18 = arith.select %16, %13, %17 : vector<8x512xi1>, vector<8x512xf32>
    %c16_i32 = arith.constant 16 : i32
    %19 = tpu.dynamic_rotate %2 by %c16_i32 dim 1 : vector<8x512xf32>, i32 -> vector<8x512xf32>
    %cst_8 = arith.constant 0.000000e+00 : f32
    %20 = vector.shape_cast %6 : vector<1x512xi1> to vector<1x512xi1>
    %21 = vector.broadcast %20 : vector<1x512xi1> to vector<8x512xi1>
    %22 = vector.broadcast %cst_8 : f32 to vector<8x512xf32>
    %23 = arith.select %21, %19, %22 : vector<8x512xi1>, vector<8x512xf32>
    %c15_i32_9 = arith.constant 15 : i32
    %24 = tpu.dynamic_rotate %2 by %c15_i32_9 dim 1 : vector<8x512xf32>, i32 -> vector<8x512xf32>
    %25 = arith.andi %6, %12 : vector<1x512xi1>
    %cst_10 = arith.constant 0.000000e+00 : f32
    %26 = vector.shape_cast %25 : vector<1x512xi1> to vector<1x512xi1>
    %27 = vector.broadcast %26 : vector<1x512xi1> to vector<8x512xi1>
    %28 = vector.broadcast %cst_10 : f32 to vector<8x512xf32>
    %29 = arith.select %27, %24, %28 : vector<8x512xi1>, vector<8x512xf32>
    %c1_i32_11 = arith.constant 1 : i32
    %30 = tpu.dynamic_rotate %2 by %c1_i32_11 dim 1 : vector<8x512xf32>, i32 -> vector<8x512xf32>
    %cst_12 = arith.constant 0.000000e+00 : f32
    %31 = vector.shape_cast %10 : vector<1x512xi1> to vector<1x512xi1>
    %32 = vector.broadcast %31 : vector<1x512xi1> to vector<8x512xi1>
    %33 = vector.broadcast %cst_12 : f32 to vector<8x512xf32>
    %34 = arith.select %32, %30, %33 : vector<8x512xi1>, vector<8x512xf32>
    %c511_i32 = arith.constant 511 : i32
    %35 = tpu.dynamic_rotate %2 by %c511_i32 dim 1 : vector<8x512xf32>, i32 -> vector<8x512xf32>
    %cst_13 = arith.constant 0.000000e+00 : f32
    %36 = vector.shape_cast %12 : vector<1x512xi1> to vector<1x512xi1>
    %37 = vector.broadcast %36 : vector<1x512xi1> to vector<8x512xi1>
    %38 = vector.broadcast %cst_13 : f32 to vector<8x512xf32>
    %39 = arith.select %37, %35, %38 : vector<8x512xi1>, vector<8x512xf32>
    %c497_i32 = arith.constant 497 : i32
    %40 = tpu.dynamic_rotate %2 by %c497_i32 dim 1 : vector<8x512xf32>, i32 -> vector<8x512xf32>
    %41 = arith.andi %8, %10 : vector<1x512xi1>
    %cst_14 = arith.constant 0.000000e+00 : f32
    %42 = vector.shape_cast %41 : vector<1x512xi1> to vector<1x512xi1>
    %43 = vector.broadcast %42 : vector<1x512xi1> to vector<8x512xi1>
    %44 = vector.broadcast %cst_14 : f32 to vector<8x512xf32>
    %45 = arith.select %43, %40, %44 : vector<8x512xi1>, vector<8x512xf32>
    %c496_i32 = arith.constant 496 : i32
    %46 = tpu.dynamic_rotate %2 by %c496_i32 dim 1 : vector<8x512xf32>, i32 -> vector<8x512xf32>
    %cst_15 = arith.constant 0.000000e+00 : f32
    %47 = vector.shape_cast %8 : vector<1x512xi1> to vector<1x512xi1>
    %48 = vector.broadcast %47 : vector<1x512xi1> to vector<8x512xi1>
    %49 = vector.broadcast %cst_15 : f32 to vector<8x512xf32>
    %50 = arith.select %48, %46, %49 : vector<8x512xi1>, vector<8x512xf32>
    %c495_i32 = arith.constant 495 : i32
    %51 = tpu.dynamic_rotate %2 by %c495_i32 dim 1 : vector<8x512xf32>, i32 -> vector<8x512xf32>
    %52 = arith.andi %8, %12 : vector<1x512xi1>
    %cst_16 = arith.constant 0.000000e+00 : f32
    %53 = vector.shape_cast %52 : vector<1x512xi1> to vector<1x512xi1>
    %54 = vector.broadcast %53 : vector<1x512xi1> to vector<8x512xi1>
    %55 = vector.broadcast %cst_16 : f32 to vector<8x512xf32>
    %56 = arith.select %54, %51, %55 : vector<8x512xi1>, vector<8x512xf32>
    %57 = tpu.concatenate %18, %23, %29, %34, %2, %39, %45, %50, %56 in 0 : vector<8x512xf32>, vector<8x512xf32>, vector<8x512xf32>, vector<8x512xf32>, vector<8x512xf32>, vector<8x512xf32>, vector<8x512xf32>, vector<8x512xf32>, vector<8x512xf32> -> vector<72x512xf32>
    %c0_17 = arith.constant 0 : index
    %c0_18 = arith.constant 0 : index
    %58 = vector.load %arg3[%c0_17, %c0_18] : memref<8x72xf32, #tpu.memory_space<vmem>>, vector<8x72xf32>
    %cst_19 = arith.constant dense<0.000000e+00> : vector<8x512xf32>
    %59 = tpu.matmul %58, %57, %cst_19 {dimension_numbers = #tpu.dot_dimension_numbers<[1], [0], [0], [1], [0, 0, 1, 1], [], []>} : vector<8x72xf32>, vector<72x512xf32>, vector<8x512xf32> -> vector<8x512xf32>
    %c0_20 = arith.constant 0 : index
    %c0_21 = arith.constant 0 : index
    %60 = vector.load %arg4[%c0_20, %c0_21] : memref<8x1xf32, #tpu.memory_space<vmem>>, vector<8x1xf32>
    %61 = vector.broadcast %60 : vector<8x1xf32> to vector<8x512xf32>
    %62 = arith.addf %59, %61 : vector<8x512xf32>
    %cst_22 = arith.constant dense<0.000000e+00> : vector<8xf32>
    %63 = vector.multi_reduction <add>, %62, %cst_22 [1] : vector<8x512xf32> to vector<8xf32>
    %64 = vector.shape_cast %63 : vector<8xf32> to vector<8x1xf32>
    %cst_23 = arith.constant 0.001953125 : f32
    %65 = vector.broadcast %cst_23 : f32 to vector<8x1xf32>
    %66 = arith.mulf %64, %65 : vector<8x1xf32>
    %67 = arith.mulf %62, %62 : vector<8x512xf32>
    %cst_24 = arith.constant dense<0.000000e+00> : vector<8xf32>
    %68 = vector.multi_reduction <add>, %67, %cst_24 [1] : vector<8x512xf32> to vector<8xf32>
    %69 = vector.shape_cast %68 : vector<8xf32> to vector<8x1xf32>
    %cst_25 = arith.constant 0.001953125 : f32
    %70 = vector.broadcast %cst_25 : f32 to vector<8x1xf32>
    %71 = arith.mulf %69, %70 : vector<8x1xf32>
    %72 = arith.mulf %66, %66 : vector<8x1xf32>
    %73 = arith.subf %71, %72 : vector<8x1xf32>
    %cst_26 = arith.constant 9.99999974E-6 : f32
    %74 = vector.broadcast %cst_26 : f32 to vector<8x1xf32>
    %75 = arith.addf %73, %74 : vector<8x1xf32>
    %76 = math.rsqrt %75 : vector<8x1xf32>
    %77 = vector.broadcast %66 : vector<8x1xf32> to vector<8x512xf32>
    %78 = arith.subf %62, %77 : vector<8x512xf32>
    %79 = vector.broadcast %76 : vector<8x1xf32> to vector<8x512xf32>
    %80 = arith.mulf %78, %79 : vector<8x512xf32>
    %cst_27 = arith.constant 0.000000e+00 : f32
    %81 = vector.broadcast %cst_27 : f32 to vector<8x512xf32>
    %82 = arith.maximumf %80, %81 : vector<8x512xf32>
    %c0_28 = arith.constant 0 : index
    %c0_29 = arith.constant 0 : index
    %83 = vector.load %arg5[%c0_28, %c0_29] : memref<8x8xf32, #tpu.memory_space<vmem>>, vector<8x8xf32>
    %cst_30 = arith.constant dense<0.000000e+00> : vector<8x512xf32>
    %84 = tpu.matmul %83, %82, %cst_30 {dimension_numbers = #tpu.dot_dimension_numbers<[1], [0], [0], [1], [0, 0, 1, 1], [], []>} : vector<8x8xf32>, vector<8x512xf32>, vector<8x512xf32> -> vector<8x512xf32>
    %c0_31 = arith.constant 0 : index
    %c0_32 = arith.constant 0 : index
    %85 = vector.load %arg6[%c0_31, %c0_32] : memref<8x1xf32, #tpu.memory_space<vmem>>, vector<8x1xf32>
    %86 = vector.broadcast %85 : vector<8x1xf32> to vector<8x512xf32>
    %87 = arith.addf %84, %86 : vector<8x512xf32>
    %cst_33 = arith.constant dense<0.000000e+00> : vector<8xf32>
    %88 = vector.multi_reduction <add>, %87, %cst_33 [1] : vector<8x512xf32> to vector<8xf32>
    %89 = vector.shape_cast %88 : vector<8xf32> to vector<8x1xf32>
    %cst_34 = arith.constant 0.001953125 : f32
    %90 = vector.broadcast %cst_34 : f32 to vector<8x1xf32>
    %91 = arith.mulf %89, %90 : vector<8x1xf32>
    %92 = arith.mulf %87, %87 : vector<8x512xf32>
    %cst_35 = arith.constant dense<0.000000e+00> : vector<8xf32>
    %93 = vector.multi_reduction <add>, %92, %cst_35 [1] : vector<8x512xf32> to vector<8xf32>
    %94 = vector.shape_cast %93 : vector<8xf32> to vector<8x1xf32>
    %cst_36 = arith.constant 0.001953125 : f32
    %95 = vector.broadcast %cst_36 : f32 to vector<8x1xf32>
    %96 = arith.mulf %94, %95 : vector<8x1xf32>
    %97 = arith.mulf %91, %91 : vector<8x1xf32>
    %98 = arith.subf %96, %97 : vector<8x1xf32>
    %cst_37 = arith.constant 9.99999974E-6 : f32
    %99 = vector.broadcast %cst_37 : f32 to vector<8x1xf32>
    %100 = arith.addf %98, %99 : vector<8x1xf32>
    %101 = math.rsqrt %100 : vector<8x1xf32>
    %102 = vector.broadcast %91 : vector<8x1xf32> to vector<8x512xf32>
    %103 = arith.subf %87, %102 : vector<8x512xf32>
    %104 = vector.broadcast %101 : vector<8x1xf32> to vector<8x512xf32>
    %105 = arith.mulf %103, %104 : vector<8x512xf32>
    %106 = arith.addf %0, %105 : vector<8x512xf32>
    %c0_38 = arith.constant 0 : index
    %c0_39 = arith.constant 0 : index
    %107 = vector.load %arg7[%c0_38, %c0_39] : memref<8x512xf32, #tpu.memory_space<vmem>>, vector<8x512xf32>
    tpu.vector_store %arg7[%c0_38, %c0_39], %106 {strides = array<i32>} : memref<8x512xf32, #tpu.memory_space<vmem>>, vector<8x512xf32>,
    return
  }
}

</mosaic_0001>

<bundles_post_ra>
// kernel: tpu_custom_call.1
= control target key start
LH: loop header
LB: loop body
LE: loop exit
PB: predicated region body
PF: predicated region fallthrough
CT: control target
= control target key end

     0   :  { %12 = vsyncpa [#allocation3], 0  ;;  %s1203_s0 = inlined_call_operand.hbm [shape: f32[8,512], index: 0, kind: input, shape index: {}]   ;;  %s1204_s1 = inlined_call_operand.hbm [shape: s32[1,512], index: 1, kind: input, shape index: {}]   ;;  %s1205_s2 = inlined_call_operand.vmem [shape: s32[1,512], index: 2, kind: input, shape index: {}]   ;;  %s1206_s3 = inlined_call_operand.vmem [shape: f32[8,72], index: 3, kind: input, shape index: {}]   ;;  %s1207_s4 = inlined_call_operand.vmem [shape: f32[8,1], index: 4, kind: input, shape index: {}]   ;;  %s1208_s5 = inlined_call_operand.vmem [shape: f32[8,8], index: 5, kind: input, shape index: {}]   ;;  %s1209_s6 = inlined_call_operand.vmem [shape: f32[8,1], index: 6, kind: input, shape index: {}]   ;;  %s1210_s7 = inlined_call_operand.hbm [shape: f32[8,512], index: 7, kind: output, shape index: {}]  }
   0x1   :  { %13 = vsyncpa [#allocation6], 0 }
   0x2   :  { %14 = vsyncpa [#allocation4], 0  ;;  %s886_s24 = smov [#allocation2]   ;;  %s887_s26 = smov [#allocation5]  }
   0x3   :  { %s21_s25 = sshll.u32 %s886_s24, 4  ;;  %s31_s27 = sshll.u32 %s887_s26, 4  ;;  %s22_s25 = int_to_ptr.vmem [resolvable:$true] %s21_s25  ;;  %s32_s27 = int_to_ptr.vmem [resolvable:$true] %s31_s27 }
   0x4   :  { %s828_s28 = scalar_lea.vmem %s22_s25, 512  ;;  %p833_p1 = scmp.lt.s32.totalorder %s22_s25, %s22_s25 }
   0x5   :  { %p829_p0 = scmp.ne.s32.totalorder %s22_s25, %s828_s28  ;;  %p834_p2 = scmp.lt.s32.totalorder %s828_s28, %s828_s28 }
   0x7   :  { %p835_p3 = por %p834_p2, %p833_p1 }
   0x9   :  { %p836_p4 = pnand %p835_p3, %p829_p0 }
   0xb   :  { %839 = shalt.err (!%p836_p4)
}
   0xc   :  { %24 = dma.hbm_to_vmem [thread:$0]  %s1203_s0, 512, %s22_s25, [#allocation3]  }
   0xd   :  { %s848_s8 = scalar_lea.vmem %s32_s27, 64  ;;  %p853_p6 = scmp.lt.s32.totalorder %s32_s27, %s32_s27 }
   0xe   :  { %p849_p5 = scmp.ne.s32.totalorder %s32_s27, %s848_s8  ;;  %p854_p7 = scmp.lt.s32.totalorder %s848_s8, %s848_s8 }
  0x10   :  { %p855_p8 = por %p854_p7, %p853_p6 }
  0x12   :  { %p856_p9 = pnand %p855_p8, %p849_p5 }
  0x14   :  { %859 = shalt.err (!%p856_p9)
}
  0x15   :  { %34 = dma.hbm_to_vmem [thread:$0]  %s1204_s1, 64, %s32_s27, [#allocation6]  }
  0x16   :  { %880 = dma.done.wait [#allocation3], 512  }
  0x17   :  { %881 = vsyncadd [#allocation3], 4294966784 }
  0x18   :  { %882 = dma.done.wait [#allocation6], 64  }
  0x19   :  { %883 = vsyncadd [#allocation6], 4294967232  ;;  %v888_v0 = vmov 0   ;;  %v947_v1 = vld [vmem:[#allocation2 + $0x8] sm:$0xff]  ;;  %v949_v2 = vld [vmem:[#allocation2] sm:$0xff]  ;;  %s889_s0 = smov 111   ;;  %v73_v13 = vlaneseq }
  0x1a   :  { %814 = vset.pattern.permute.xlu0 %v888_v0  ;;  %815 = vset.pattern.permute.xlu1 %v888_v0  ;;  %v951_v3 = vld [vmem:[#allocation2 + $0x10] sm:$0xff]  ;;  %v954_v4 = vmax.f32 %v947_v1, 0.0  ;;  %v957_v5 = vmax.f32 %v949_v2, 0.0  ;;  %s890_s1 = smov 112   ;;  %v968_v7 = vld [vmem:[#allocation2 + $0x18] sm:$0xff]  ;;  %s891_s11 = smov 113  }
  0x1b   :  { %v962_v6 = vmax.f32 %v951_v3, 0.0  ;;  %v973_v8 = vmax.f32 %v968_v7, 0.0  ;;  %s892_s12 = smov 127   ;;  %s893_s13 = smov 1   ;;  %v896_v9 = vmov 0.0   ;;  %v376_v10 = vld [vmem:[%s1207_s4] sm:$0xff] }
  0x1c   :  { %338 = vrot.lane.b32.xlu0 %v954_v4, %s889_s0  ;;  %336 = vrot.lane.b32.xlu1 %v957_v5, %s889_s0  ;;  %s894_s14 = smov 15   ;;  %s895_s15 = smov 16   ;;  %v1004_v11 = vld [vmem:[#allocation5] sm:$0xf]  ;;  %v83_v14 = vshrl.u32 %v73_v13, 7  ;;  %v1021_v18 = vand.u32 127, %v73_v13 }
  0x1d   :  { %450 = vmatprep.mubr.f32.mxu0 %v896_v9  ;;  %521 = vmatprep.mubr.f32.mxu1 %v896_v9  ;;  %s897_s16 = smov 17   ;;  %v1009_v12 = vld [vmem:[%s1205_s2] sm:$0xf]  ;;  %vm62_vm0 = vcmp.lt.s32.totalorder %v1004_v11, 15 }
  0x1e   :  { %vm64_vm1 = vcmp.lt.s32.totalorder %v1009_v12, 15  ;;  %v1015_v15 = vsub.s32 1, %v83_v14  ;;  %v1018_v17 = vsub.s32 0, %v83_v14  ;;  %vm63_vm3 = vcmp.ge.s32.totalorder %v1009_v12, 1 }
  0x1f   :  { %vm349_vm2 = vmand %vm62_vm0, %vm64_vm1  ;;  %v311_v23 = vsel %vm62_vm0, 1, %v888_v0  ;;  %vm344_vm5 = vcmp.lt.s32.totalorder %v1021_v18, 111  ;;  %vm306_vm8 = vcmp.lt.s32.totalorder %v1021_v18, 112  ;;  %v1041_v32 = vsub.s32 3, %v83_v14 }
  0x20   :  { %340 = vrot.lane.b32.xlu0 %v962_v6, %s889_s0  ;;  %300 = vrot.lane.b32.xlu1 %v954_v4, %s890_s1  ;;  %v350_v16 = vsel %vm349_vm2, 1, %v888_v0  ;;  %vm272_vm4 = vmand %vm62_vm0, %vm63_vm3  ;;  %v319_v24 = vrot.slane %v311_v23, %v1015_v15  ;;  %v315_v27 = vrot.slane %v311_v23, %v1018_v17  ;;  %v1043_v35 = vsub.s32 2, %v83_v14 }
  0x21   :  { %v358_v19 = vrot.slane %v350_v16, %v1015_v15  ;;  %v354_v22 = vrot.slane %v350_v16, %v1018_v17  ;;  %v1032_v28 = vsel %vm272_vm4, 1, %v888_v0  ;;  %vm267_vm11 = vcmp.lt.s32.totalorder %v1021_v18, 113 }
  0x22   :  { %vm329_vm9 = vcmp.eq.s32.totalorder %v319_v24, 1  ;;  %v281_v31 = vrot.slane %v1032_v28, %v1015_v15  ;;  %vm328_vm10 = vcmp.eq.s32.totalorder %v315_v27, 1  ;;  %v277_v38 = vrot.slane %v1032_v28, %v1018_v17 }
  0x23   :  { %vm368_vm6 = vcmp.eq.s32.totalorder %v358_v19, 1  ;;  %vm367_vm7 = vcmp.eq.s32.totalorder %v354_v22, 1  ;;  %v366_v39 = vrot.slane %v350_v16, %v1041_v32  ;;  %v362_v42 = vrot.slane %v350_v16, %v1043_v35 }
  0x24   :  { %302 = vrot.lane.b32.xlu0 %v962_v6, %s890_s1  ;;  %298 = vrot.lane.b32.xlu1 %v957_v5, %s890_s1  ;;  %vm291_vm12 = vcmp.eq.s32.totalorder %v281_v31, 1  ;;  %v234_v43 = vsel %vm64_vm1, 1, %v888_v0  ;;  %vm290_vm13 = vcmp.eq.s32.totalorder %v277_v38, 1  ;;  %vm229_vm0 = vcmp.lt.s32.totalorder %v1021_v18, 127 }
  0x25   :  { %vm370_vm14 = vcmp.eq.s32.totalorder %v366_v39, 1  ;;  %v242_v45 = vrot.slane %v234_v43, %v1015_v15  ;;  %vm369_vm15 = vcmp.eq.s32.totalorder %v362_v42, 1  ;;  %v238_v51 = vrot.slane %v234_v43, %v1018_v17 }
  0x26   :  { %v327_v52 = vrot.slane %v311_v23, %v1041_v32  ;;  %v323_v55 = vrot.slane %v311_v23, %v1043_v35  ;;  %v289_v57 = vrot.slane %v1032_v28, %v1041_v32  ;;  %v285_v60 = vrot.slane %v1032_v28, %v1043_v35 }
  0x27   :  { %vm252_vm2 = vcmp.eq.s32.totalorder %v242_v45, 1  ;;  %vm251_vm4 = vcmp.eq.s32.totalorder %v238_v51, 1  ;;  %v1079_v61 = vsel %vm63_vm3, 1, %v888_v0  ;;  %v250_v14 = vrot.slane %v234_v43, %v1041_v32 }
  0x28   :  { %261 = vrot.lane.b32.xlu0 %v954_v4, %s891_s11  ;;  %263 = vrot.lane.b32.xlu1 %v962_v6, %s891_s11  ;;  %v204_v13 = vrot.slane %v1079_v61, %v1015_v15 }
  0x2c   :  { %342 = vrot.lane.b32.xlu0 %v973_v8, %s889_s0  ;;  %259 = vrot.lane.b32.xlu1 %v957_v5, %s891_s11 }
  0x30   :  { %223 = vrot.lane.b32.xlu0 %v954_v4, %s892_s12  ;;  %225 = vrot.lane.b32.xlu1 %v962_v6, %s892_s12 }
  0x34   :  { %304 = vrot.lane.b32.xlu0 %v973_v8, %s890_s1  ;;  %221 = vrot.lane.b32.xlu1 %v957_v5, %s892_s12 }
  0x38   :  { %265 = vrot.lane.b32.xlu0 %v973_v8, %s891_s11  ;;  %183 = vrot.lane.b32.xlu1 %v957_v5, %s893_s13 }
  0x3c   :  { %185 = vrot.lane.b32.xlu0 %v954_v4, %s893_s13  ;;  %227 = vrot.lane.b32.xlu1 %v973_v8, %s892_s12 }
  0x40   :  { %189 = vrot.lane.b32.xlu0 %v973_v8, %s893_s13  ;;  %144 = vrot.lane.b32.xlu1 %v957_v5, %s894_s14 }
  0x44   :  { %146 = vrot.lane.b32.xlu0 %v954_v4, %s894_s14  ;;  %150 = vrot.lane.b32.xlu1 %v973_v8, %s894_s14 }
  0x48   :  { %106 = vrot.lane.b32.xlu0 %v957_v5, %s895_s15  ;;  %108 = vrot.lane.b32.xlu1 %v954_v4, %s895_s15 }
  0x4c   :  { %187 = vrot.lane.b32.xlu0 %v962_v6, %s893_s13  ;;  %112 = vrot.lane.b32.xlu1 %v973_v8, %s895_s15 }
  0x50   :  { %65 = vrot.lane.b32.xlu0 %v957_v5, %s897_s16  ;;  %67 = vrot.lane.b32.xlu1 %v954_v4, %s897_s16 }
  0x54   :  { %148 = vrot.lane.b32.xlu0 %v962_v6, %s894_s14  ;;  %71 = vrot.lane.b32.xlu1 %v973_v8, %s897_s16 }
  0x58   :  { %110 = vrot.lane.b32.xlu0 %v962_v6, %s895_s15  ;;  %69 = vrot.lane.b32.xlu1 %v962_v6, %s897_s16 }
  0x5c   :  { %379 = vperm.xlu0 %814, %v376_v10  }
  0x8e   :  { %v339_v20 = vpop.permute.xlu0 %338  ;;  %v337_v21 = vpop.permute.xlu1 %336 }
  0x8f   :  { %v347_v30 = vsel %vm344_vm5, %v337_v21, %v339_v20 }
  0x92   :  { %v341_v25 = vpop.permute.xlu0 %340  ;;  %v301_v26 = vpop.permute.xlu1 %300 }
  0x93   :  { %v346_v29 = vsel %vm344_vm5, %v339_v20, %v341_v25  ;;  %v246_v20 = vrot.slane %v234_v43, %v1043_v35  ;;  %v208_v43 = vrot.slane %v1079_v61, %v1043_v35 }
  0x94   :  { %765 = vmatprep.subr.msk.mxu0 %vm368_vm6, %v346_v29  ;;  %vm330_vm6 = vcmp.eq.s32.totalorder %v323_v55, 1 }
  0x95   :  { %766 = vmatpush1.msk.msra.mxu0 %vm367_vm7, %v347_v30  ;;  %vm61_vm7 = vcmp.ge.s32.totalorder %v1004_v11, 1 }
  0x96   :  { %v303_v33 = vpop.permute.xlu0 %302  ;;  %v299_v34 = vpop.permute.xlu1 %298 }
  0x97   :  { %v308_v36 = vsel %vm306_vm8, %v301_v26, %v303_v33  ;;  %v309_v37 = vsel %vm306_vm8, %v299_v34, %v301_v26 }
  0x98   :  { %767 = vmatprep.subr.msk.mxu0 %vm329_vm9, %v308_v36  ;;  %vm293_vm9 = vcmp.eq.s32.totalorder %v289_v57, 1 }
  0x99   :  { %768 = vmatpush1.msk.msra.mxu0 %vm328_vm10, %v309_v37  ;;  %vm292_vm10 = vcmp.eq.s32.totalorder %v285_v60, 1 }
  0x9a   :  { %v262_v40 = vpop.permute.xlu0 %261  ;;  %v264_v41 = vpop.permute.xlu1 %263 }
  0x9b   :  { %v269_v44 = vsel %vm267_vm11, %v262_v40, %v264_v41 }
  0x9c   :  { %769 = vmatprep.subr.msk.mxu0 %vm291_vm12, %v269_v44  ;;  %vm191_vm12 = vcmp.lt.s32.totalorder %v1021_v18, 1 }
  0x9e   :  { %v343_v46 = vpop.permute.xlu0 %342  ;;  %v260_v47 = vpop.permute.xlu1 %259 }
  0x9f   :  { %v270_v48 = vsel %vm267_vm11, %v260_v47, %v262_v40  ;;  %v348_v49 = vsel %vm344_vm5, %v343_v46, %v337_v21  ;;  %v345_v50 = vsel %vm344_vm5, %v341_v25, %v343_v46  ;;  %vm331_vm5 = vcmp.eq.s32.totalorder %v327_v52, 1 }
  0xa0   :  { %770 = vmatpush1.msk.msra.mxu0 %vm290_vm13, %v270_v48  ;;  %782 = vmatprep.subr.msk.mxu1 %vm370_vm14, %v348_v49  ;;  %vm214_vm13 = vcmp.eq.s32.totalorder %v204_v13, 1  ;;  %vm254_vm14 = vcmp.eq.s32.totalorder %v250_v14, 1  ;;  %v212_v40 = vrot.slane %v1079_v61, %v1041_v32 }
  0xa1   :  { %783 = vmatpush1.msk.msra.mxu1 %vm369_vm15, %v345_v50  ;;  %vm253_vm15 = vcmp.eq.s32.totalorder %v246_v20, 1 }
  0xa2   :  { %v224_v53 = vpop.permute.xlu0 %223  ;;  %v226_v54 = vpop.permute.xlu1 %225 }
  0xa3   :  { %v231_v56 = vsel %vm229_vm0, %v224_v53, %v226_v54 }
  0xa4   :  { %771 = vmatprep.subr.msk.mxu0 %vm252_vm2, %v231_v56 }
  0xa6   :  { %v305_v58 = vpop.permute.xlu0 %304  ;;  %v222_v59 = vpop.permute.xlu1 %221 }
  0xa7   :  { %v307_v62 = vsel %vm306_vm8, %v303_v33, %v305_v58  ;;  %v310_v63 = vsel %vm306_vm8, %v305_v58, %v299_v34  ;;  %v232_v10 = vsel %vm229_vm0, %v222_v59, %v224_v53  ;;  %vm157_vm8 = vmand %vm61_vm7, %vm64_vm1  ;;  %v1121_v33 = vsel %vm61_vm7, 1, %v888_v0 }
  0xa8   :  { %772 = vmatpush1.msk.msra.mxu0 %vm251_vm4, %v232_v10  ;;  %784 = vmatprep.subr.msk.mxu1 %vm331_vm5, %v310_v63  ;;  %v1106_v24 = vsel %vm157_vm8, 1, %v888_v0  ;;  %v127_v36 = vrot.slane %v1121_v33, %v1015_v15  ;;  %vm80_vm4 = vmand %vm61_vm7, %vm63_vm3  ;;  %vm114_vm5 = vcmp.lt.s32.totalorder %v1021_v18, 16  ;;  %vm216_vm7 = vcmp.eq.s32.totalorder %v212_v40, 1 }
  0xa9   :  { %785 = vmatpush1.msk.msra.mxu1 %vm330_vm6, %v307_v62  ;;  %408 = vmatprep.subr.mxu0 %v954_v4  ;;  %v200_v4 = vrot.slane %v1079_v61, %v1018_v17  ;;  %v166_v28 = vrot.slane %v1106_v24, %v1015_v15  ;;  %v162_v31 = vrot.slane %v1106_v24, %v1018_v17  ;;  %v81_v12 = vsel %vm80_vm4, 1, %v888_v0 }
  0xaa   :  { %v266_v16 = vpop.permute.xlu0 %265  ;;  %v184_v19 = vpop.permute.xlu1 %183  ;;  %409 = vmatpush1.msra.mxu0 %v957_v5  ;;  %vm137_vm6 = vcmp.eq.s32.totalorder %v127_v36, 1  ;;  %v89_v44 = vrot.slane %v81_v12, %v1015_v15  ;;  %v85_v15 = vrot.slane %v81_v12, %v1018_v17  ;;  %v174_v49 = vrot.slane %v1106_v24, %v1041_v32 }
  0xab   :  { %v268_v21 = vsel %vm267_vm11, %v264_v41, %v266_v16  ;;  %v271_v22 = vsel %vm267_vm11, %v266_v16, %v260_v47  ;;  %vm213_vm1 = vcmp.eq.s32.totalorder %v200_v4, 1  ;;  %vm152_vm11 = vcmp.lt.s32.totalorder %v1021_v18, 15 }
  0xac   :  { %786 = vmatprep.subr.msk.mxu1 %vm293_vm9, %v271_v22  ;;  %vm175_vm2 = vcmp.eq.s32.totalorder %v162_v31, 1  ;;  %vm215_vm9 = vcmp.eq.s32.totalorder %v208_v43, 1  ;;  %vm99_vm8 = vcmp.eq.s32.totalorder %v89_v44, 1  ;;  %v170_v52 = vrot.slane %v1106_v24, %v1043_v35 }
  0xad   :  { %787 = vmatpush1.msk.msra.mxu1 %vm292_vm10, %v268_v21  ;;  %vm75_vm10 = vcmp.lt.s32.totalorder %v1021_v18, 17  ;;  %v131_v57 = vrot.slane %v1121_v33, %v1043_v35  ;;  %v97_v61 = vrot.slane %v81_v12, %v1041_v32  ;;  %v93_v62 = vrot.slane %v81_v12, %v1043_v35 }
  0xae   :  { %v186_v5 = vpop.permute.xlu0 %185  ;;  %v228_v23 = vpop.permute.xlu1 %227  ;;  %vm567_vm4 = vcmask 64512  }
  0xaf   :  { %v194_v25 = vsel %vm191_vm12, %v184_v19, %v186_v5  ;;  %v230_v26 = vsel %vm229_vm0, %v226_v54, %v228_v23  ;;  %v233_v27 = vsel %vm229_vm0, %v228_v23, %v222_v59  ;;  %vm176_vm0 = vcmp.eq.s32.totalorder %v166_v28, 1 }
  0xb0   :  { %773 = vmatprep.subr.msk.mxu0 %vm214_vm13, %v194_v25  ;;  %788 = vmatprep.subr.msk.mxu1 %vm254_vm14, %v233_v27  ;;  %vm178_vm13 = vcmp.eq.s32.totalorder %v174_v49, 1  ;;  %v135_v54 = vrot.slane %v1121_v33, %v1041_v32  ;;  %vm177_vm14 = vcmp.eq.s32.totalorder %v170_v52, 1 }
  0xb1   :  { %789 = vmatpush1.msk.msra.mxu1 %vm253_vm15, %v230_v26  ;;  %vm382_vm15 = vcmask 588800  }
  0xb2   :  { %v190_v29 = vpop.permute.xlu0 %189  ;;  %v145_v30 = vpop.permute.xlu1 %144  ;;  %479 = vmatprep.subr.mxu1 %v973_v8 }
  0xb3   :  { %v195_v34 = vsel %vm191_vm12, %v190_v29, %v184_v19  ;;  %480 = vmatpush1.msra.mxu1 %v962_v6  ;;  %v123_v6 = vrot.slane %v1121_v33, %v1018_v17  ;;  %v375_v17 = vld [vmem:[%s1206_s3] sm:$0xff] }
  0xb4   :  { %774 = vmatpush1.msk.msra.mxu0 %vm213_vm1, %v195_v34  ;;  %vm139_vm1 = vcmp.eq.s32.totalorder %v135_v54, 1  ;;  %v561_v34 = vld [vmem:[%s1209_s6] sm:$0xff] }
  0xb5   :  { %vm136_vm3 = vcmp.eq.s32.totalorder %v123_v6, 1 }
  0xb6   :  { %v147_v37 = vpop.permute.xlu0 %146  ;;  %v151_v38 = vpop.permute.xlu1 %150 }
  0xb7   :  { %v155_v39 = vsel %vm152_vm11, %v145_v30, %v147_v37  ;;  %v156_v8 = vsel %vm152_vm11, %v151_v38, %v145_v30 }
  0xb8   :  { %775 = vmatprep.subr.msk.mxu0 %vm176_vm0, %v155_v39  ;;  %vm138_vm0 = vcmp.eq.s32.totalorder %v131_v57, 1 }
  0xb9   :  { %776 = vmatpush1.msk.msra.mxu0 %vm175_vm2, %v156_v8  ;;  %vm100_vm2 = vcmp.eq.s32.totalorder %v93_v62, 1 }
  0xba   :  { %v107_v41 = vpop.permute.xlu0 %106  ;;  %v109_v42 = vpop.permute.xlu1 %108 }
  0xbb   :  { %v117_v11 = vsel %vm114_vm5, %v107_v41, %v109_v42 }
  0xbc   :  { %777 = vmatprep.subr.msk.mxu0 %vm137_vm6, %v117_v11 }
  0xbe   :  { %v188_v45 = vpop.permute.xlu0 %187  ;;  %v113_v46 = vpop.permute.xlu1 %112 }
  0xbf   :  { %v192_v47 = vsel %vm191_vm12, %v188_v45, %v190_v29  ;;  %v193_v48 = vsel %vm191_vm12, %v186_v5, %v188_v45  ;;  %v118_v0 = vsel %vm114_vm5, %v113_v46, %v107_v41  ;;  %vm98_vm12 = vcmp.eq.s32.totalorder %v85_v15, 1 }
  0xc0   :  { %778 = vmatpush1.msk.msra.mxu0 %vm136_vm3, %v118_v0  ;;  %790 = vmatprep.subr.msk.mxu1 %vm216_vm7, %v192_v47 }
  0xc1   :  { %791 = vmatpush1.msk.msra.mxu1 %vm215_vm9, %v193_v48 }
  0xc2   :  { %v66_v50 = vpop.permute.xlu0 %65  ;;  %v68_v51 = vpop.permute.xlu1 %67 }
  0xc3   :  { %v78_v53 = vsel %vm75_vm10, %v66_v50, %v68_v51 }
  0xc4   :  { %779 = vmatprep.subr.msk.mxu0 %vm99_vm8, %v78_v53 }
  0xc6   :  { %v149_v55 = vpop.permute.xlu0 %148  ;;  %v72_v56 = vpop.permute.xlu1 %71 }
  0xc7   :  { %v153_v58 = vsel %vm152_vm11, %v149_v55, %v151_v38  ;;  %v154_v59 = vsel %vm152_vm11, %v147_v37, %v149_v55  ;;  %v79_v60 = vsel %vm75_vm10, %v72_v56, %v66_v50  ;;  %vm101_vm11 = vcmp.eq.s32.totalorder %v97_v61, 1  ;;  %v560_v50 = vld [vmem:[%s1208_s5] sm:$0xff]  ;;  %s898_s5 = smov [#allocation7]  }
  0xc8   :  { %780 = vmatpush1.msk.msra.mxu0 %vm98_vm12, %v79_v60  ;;  %792 = vmatprep.subr.msk.mxu1 %vm178_vm13, %v153_v58  ;;  %s755_s23 = sshll.u32 %s898_s5, 4  ;;  %s756_s23 = int_to_ptr.vmem [resolvable:$true] %s755_s23 }
  0xc9   :  { %793 = vmatpush1.msk.msra.mxu1 %vm177_vm14, %v154_v59  ;;  %781 = vmatmul.mubr.msk.f32.vlgmr.msra.gmra.mxu0 %vm382_vm15, %v375_v17  ;;  %s860_s24 = scalar_lea.vmem %s756_s23, 512  ;;  %p865_p11 = scmp.lt.s32.totalorder %s756_s23, %s756_s23 }
  0xca   :  { %v111_v63 = vpop.permute.xlu0 %110  ;;  %v70_v10 = vpop.permute.xlu1 %69  ;;  %635 = vmatprep.mubr.f32.mxu0 %v896_v9  ;;  %p861_p10 = scmp.ne.s32.totalorder %s756_s23, %s860_s24  ;;  %p866_p12 = scmp.lt.s32.totalorder %s860_s24, %s860_s24 }
  0xcb   :  { %v115_v13 = vsel %vm114_vm5, %v111_v63, %v113_v46  ;;  %v116_v14 = vsel %vm114_vm5, %v109_v42, %v111_v63  ;;  %v76_v32 = vsel %vm75_vm10, %v70_v10, %v72_v56  ;;  %v77_v35 = vsel %vm75_vm10, %v68_v51, %v70_v10 }
  0xcc   :  { %794 = vmatprep.subr.msk.mxu1 %vm139_vm1, %v115_v13  ;;  %p867_p13 = por %p866_p12, %p865_p11 }
  0xcd   :  { %795 = vmatpush1.msk.msra.mxu1 %vm138_vm0, %v116_v14 }
  0xce   :  { %796 = vmatprep.subr.msk.mxu1 %vm101_vm11, %v76_v32  ;;  %p868_p0 = pnand %p867_p13, %p861_p10 }
  0xcf   :  { %797 = vmatpush1.msk.msra.mxu1 %vm100_vm2, %v77_v35 }
  0xd0   :  { %798 = vmatmul.mubr.msk.f32.vlgmr.msra.gmra.mxu1 %vm382_vm15, %v375_v17 }
  0xd1   :  { %706 = vmatprep.mubr.f32.mxu1 %v896_v9 }
  0xd7   :  { %v380_v16 = vpop.permute.xlu0 %379 }
 0x189   :  { %v452_v19 = vpop.f32.mrf.mxu0 }
 0x18a   :  { %v453_v20 = vadd.f32 %v452_v19, %v380_v16 }
 0x18b   :  { %v454_v21 = vpop.f32.mrf.mxu0 }
 0x18c   :  { %v455_v22 = vadd.f32 %v454_v21, %v380_v16  ;;  %v534_v5 = vmul.f32 %v453_v20, %v453_v20 }
 0x18e   :  { %v535_v4 = vmul.f32 %v455_v22, %v455_v22  ;;  %v528_v24 = vadd.f32 %v455_v22, %v453_v20 }
 0x190   :  { %v523_v23 = vpop.f32.mrf.mxu1  ;;  %v538_v29 = vadd.f32 %v535_v4, %v534_v5 }
 0x191   :  { %v524_v25 = vadd.f32 %v523_v23, %v380_v16 }
 0x192   :  { %v525_v26 = vpop.f32.mrf.mxu1 }
 0x193   :  { %v536_v27 = vmul.f32 %v524_v25, %v524_v25  ;;  %v526_v18 = vadd.f32 %v525_v26, %v380_v16  ;;  %v529_v28 = vadd.f32 %v528_v24, %v524_v25 }
 0x195   :  { %v530_v30 = vadd.f32 %v529_v28, %v526_v18  ;;  %v537_v31 = vmul.f32 %v526_v18, %v526_v18  ;;  %v539_v33 = vadd.f32 %v538_v29, %v536_v27 }
 0x197   :  { %531 = vadd.xlane.f32.xlu1 %v530_v30  ;;  %v540_v9 = vadd.f32 %v539_v33, %v537_v31 }
 0x199   :  { %541 = vadd.xlane.f32.xlu0 %v540_v9 }
 0x1a8   :  { %564 = vperm.xlu1 %815, %v561_v34  }
 0x220   :  { %v532_v36 = vpop.xlane.xlu1 %531 }
 0x221   :  { %v533_v37 = vmul.f32 0.001953125, %v532_v36 }
 0x222   :  { %v542_v38 = vpop.xlane.xlu0 %541 }
 0x223   :  { %v543_v39 = vmul.f32 0.001953125, %v542_v38  ;;  %v544_v8 = vmul.f32 %v533_v37, %v533_v37  ;;  %v549_v41 = vsub.f32 %v455_v22, %v533_v37  ;;  %v551_v42 = vsub.f32 %v526_v18, %v533_v37 }
 0x224   :  { %v548_v43 = vsub.f32 %v453_v20, %v533_v37  ;;  %v550_v12 = vsub.f32 %v524_v25, %v533_v37  ;;  %v565_v51 = vpop.permute.xlu1 %564 }
 0x225   :  { %v545_v6 = vsub.f32 %v543_v39, %v544_v8 }
 0x227   :  { %v546_v40 = vadd.f32 1e-05, %v545_v6 }
 0x229   :  { %816 = vrsqrt.f32 %v546_v40 }
 0x236   :  { %v817_v11 = vpop.eup %816 }
 0x237   :  { %v553_v44 = vmul.f32 %v817_v11, %v549_v41  ;;  %v555_v45 = vmul.f32 %v817_v11, %v551_v42  ;;  %v552_v46 = vmul.f32 %v817_v11, %v548_v43  ;;  %v554_v47 = vmul.f32 %v817_v11, %v550_v12 }
 0x239   :  { %v557_v48 = vmax.f32 %v553_v44, 0.0  ;;  %v559_v0 = vmax.f32 %v555_v45, 0.0  ;;  %v556_v15 = vmax.f32 %v552_v46, 0.0  ;;  %v558_v49 = vmax.f32 %v554_v47, 0.0 }
 0x23b   :  { %601 = vmatprep.subr.mxu0 %v557_v48  ;;  %672 = vmatprep.subr.mxu1 %v559_v0 }
 0x23c   :  { %602 = vmatpush1.msra.mxu0 %v556_v15  ;;  %673 = vmatpush1.msra.mxu1 %v558_v49 }
 0x23d   :  { %799 = vmatmul.mubr.msk.f32.vlgmr.msra.gmra.mxu0 %vm567_vm4, %v560_v50  ;;  %800 = vmatmul.mubr.msk.f32.vlgmr.msra.gmra.mxu1 %vm567_vm4, %v560_v50 }
 0x2fd   :  { %v637_v52 = vpop.f32.mrf.mxu0  ;;  %v708_v53 = vpop.f32.mrf.mxu1 }
 0x2fe   :  { %v638_v54 = vadd.f32 %v637_v52, %v565_v51  ;;  %v709_v17 = vadd.f32 %v708_v53, %v565_v51 }
 0x2ff   :  { %v639_v55 = vpop.f32.mrf.mxu0  ;;  %v710_v57 = vpop.f32.mrf.mxu1 }
 0x300   :  { %v640_v56 = vadd.f32 %v639_v55, %v565_v51  ;;  %v719_v59 = vmul.f32 %v638_v54, %v638_v54  ;;  %v721_v61 = vmul.f32 %v709_v17, %v709_v17  ;;  %v711_v62 = vadd.f32 %v710_v57, %v565_v51 }
 0x302   :  { %v713_v58 = vadd.f32 %v640_v56, %v638_v54  ;;  %v720_v60 = vmul.f32 %v640_v56, %v640_v56  ;;  %v722_v32 = vmul.f32 %v711_v62, %v711_v62 }
 0x304   :  { %v714_v63 = vadd.f32 %v713_v58, %v709_v17  ;;  %v723_v10 = vadd.f32 %v720_v60, %v719_v59 }
 0x306   :  { %v715_v13 = vadd.f32 %v714_v63, %v711_v62  ;;  %v724_v14 = vadd.f32 %v723_v10, %v721_v61 }
 0x308   :  { %716 = vadd.xlane.f32.xlu0 %v715_v13  ;;  %v725_v35 = vadd.f32 %v724_v14, %v722_v32 }
 0x30c   :  { %726 = vadd.xlane.f32.xlu0 %v725_v35 }
 0x391   :  { %v717_v16 = vpop.xlane.xlu0 %716 }
 0x392   :  { %v718_v19 = vmul.f32 0.001953125, %v717_v16 }
 0x394   :  { %v729_v21 = vmul.f32 %v718_v19, %v718_v19  ;;  %v733_v23 = vsub.f32 %v638_v54, %v718_v19  ;;  %v734_v24 = vsub.f32 %v640_v56, %v718_v19  ;;  %v735_v25 = vsub.f32 %v709_v17, %v718_v19 }
 0x395   :  { %v727_v20 = vpop.xlane.xlu0 %726  ;;  %v736_v26 = vsub.f32 %v711_v62, %v718_v19 }
 0x396   :  { %v728_v22 = vmul.f32 0.001953125, %v727_v20 }
 0x398   :  { %v730_v4 = vsub.f32 %v728_v22, %v729_v21 }
 0x39a   :  { %v731_v5 = vadd.f32 1e-05, %v730_v4 }
 0x39c   :  { %818 = vrsqrt.f32 %v731_v5 }
 0x3a9   :  { %v819_v27 = vpop.eup %818 }
 0x3aa   :  { %v737_v18 = vmul.f32 %v819_v27, %v733_v23  ;;  %v738_v28 = vmul.f32 %v819_v27, %v734_v24  ;;  %v739_v29 = vmul.f32 %v819_v27, %v735_v25  ;;  %v740_v30 = vmul.f32 %v819_v27, %v736_v26 }
 0x3ac   :  { %v741_v31 = vadd.f32 %v737_v18, %v949_v2  ;;  %v742_v33 = vadd.f32 %v738_v28, %v947_v1  ;;  %v743_v9 = vadd.f32 %v739_v29, %v951_v3  ;;  %v744_v34 = vadd.f32 %v740_v30, %v968_v7 }
 0x3ae   :  { %745 = vst [vmem:[#allocation7] sm:$0xff] %v741_v31  ;;  %746 = vst [vmem:[#allocation7 + $0x8] sm:$0xff] %v742_v33 }
 0x3af   :  { %747 = vst [vmem:[#allocation7 + $0x10] sm:$0xff] %v743_v9  ;;  %748 = vst [vmem:[#allocation7 + $0x18] sm:$0xff] %v744_v34 }
 0x3b0   :  { %871 = shalt.err (!%p868_p0)
}
 0x3b1   :  { %758 = dma.vmem_to_hbm [thread:$0]  %s756_s23, 512, %s1210_s7, [#allocation4]  }
 0x3b2   :  { %884 = dma.done.wait [#allocation4], 512  }
 0x3b3   :  { %885 = vsyncadd [#allocation4], 4294966784 }
 0x3b4   :  { %762 = vsyncpa [#allocation3], 1 }
 0x3b5   :  { %763 = vsyncpa [#allocation6], 1 }
 0x3b6   :  { %764 = vsyncpa [#allocation4], 1 }

</bundles_post_ra>
